<compile_context>
chip_gen: v7x
topology: tpu7x:2x2x1
jax: 0.10.0
libtpu: 0.0.40
codegen_flags: <defaults>
</compile_context>

<pallas_src>
import functools

import jax
import jax.numpy as jnp
from jax.experimental import pallas as pl
from jax.experimental.pallas import tpu as pltpu


# Per-input block byte budget: 3 inputs x 2 double-buffers x 2 MiB = 12 MiB,
# safely under the v5e scoped-VMEM default (16 MiB) and trivially under
# v6e/v7x defaults (32 MiB).
_BLOCK_BYTES = 2 * 1024 * 1024


def _round_up(x: int, m: int) -> int:
    return ((x + m - 1) // m) * m


def _mape_kernel(forecast_ref, target_ref, mask_ref, out_ref, *,
                 rows, cols, tb, tt):
    i = pl.program_id(0)          # row-block index ("parallel")
    j = pl.program_id(1)          # reduction index ("arbitrary")

    @pl.when(j == 0)
    def _init():
        out_ref[...] = jnp.zeros_like(out_ref)

    f = forecast_ref[...].astype(jnp.float32)
    tg = target_ref[...].astype(jnp.float32)
    m = mask_ref[...].astype(jnp.float32)

    # divide_no_nan: NaN -> 0, +inf -> 0 (leave -inf, as in the torch ref).
    w = m / tg
    w = jnp.where(jnp.isnan(w), jnp.float32(0.0), w)
    w = jnp.where(w == jnp.inf, jnp.float32(0.0), w)
    val = jnp.abs((f - tg) * w)

    def _acc(v):
        # Sublane reduce (XLU slot, hidden under DMA) straight into the
        # resident output block — no full-tile accumulator scratch.
        out_ref[...] += jnp.sum(v, axis=0, keepdims=True)

    need_row_mask = (rows % tb) != 0
    need_col_mask = (cols % tt) != 0

    if not (need_row_mask or need_col_mask):
        # Aligned shape: no padding mask anywhere (static, trace-time skip).
        _acc(val)
    else:
        conds = []
        if need_row_mask:
            conds.append(i == pl.num_programs(0) - 1)
        if need_col_mask:
            conds.append(j == pl.num_programs(1) - 1)
        is_edge = functools.reduce(jnp.logical_or, conds)

        @pl.when(is_edge)
        def _edge():
            # Zero out padded (out-of-range) elements of partial tiles so
            # they never contribute (also kills NaN/Inf from garbage pad).
            valid = None
            if need_row_mask:
                row = i * tb + jax.lax.broadcasted_iota(jnp.int32, (tb, tt), 0)
                valid = row < rows
            if need_col_mask:
                col = j * tt + jax.lax.broadcasted_iota(jnp.int32, (tb, tt), 1)
                cv = col < cols
                valid = cv if valid is None else jnp.logical_and(valid, cv)
            _acc(jnp.where(valid, val, jnp.float32(0.0)))

        @pl.when(jnp.logical_not(is_edge))
        def _interior():
            _acc(val)


def _lane_dense_view(arrs, rows, cols):
    """Present a lane-dense (rows, C) layout when the row-major reshape is free.

    Only applied when the time dim is narrow or lane-unaligned; the loss is a
    global sum so any free reshape is semantics-preserving.
    """
    if cols % 128 == 0 and cols >= 512:
        return arrs, rows, cols
    total = rows * cols
    for c in (4096, 2048, 1024, 512, 256, 128):
        if total >= c and total % c == 0:
            r = total // c
            return tuple(a.reshape(r, c) for a in arrs), r, c
    return arrs, rows, cols


def _choose_tiles(rows, cols, itemsize):
    """(8,128)-aligned, dtype-aware tiles targeting ~2 MiB per input block."""
    tt_cap = max(128, (_BLOCK_BYTES // (256 * itemsize)) // 128 * 128)
    tt = min(_round_up(cols, 128), tt_cap)
    tb_cap = max(8, (_BLOCK_BYTES // (tt * itemsize)) // 8 * 8)
    tb = min(tb_cap, _round_up(rows, 8))
    if rows > 8:
        # Guarantee >= 2 blocks along the "parallel" axis when possible so
        # v7x's dual TensorCores both get work (no-op on v5e/v6e).
        tb = min(tb, _round_up(pl.cdiv(rows, 2), 8))
    return max(8, tb), tt


def mape_loss(insample, freq, forecast, target, mask, *, tb=None, tt=None):
    """Pallas TPU implementation of mape_loss.forward.

    forecast, target, mask: [batch, time] arrays. Returns scalar float32.
    insample / freq are ignored (as in the PyTorch module).
    """
    assert forecast.shape == target.shape == mask.shape
    b, t = forecast.shape
    total = b * t

    (f2, g2, m2), rows, cols = _lane_dense_view((forecast, target, mask), b, t)

    itemsize = max(jnp.dtype(forecast.dtype).itemsize,
                   jnp.dtype(target.dtype).itemsize,
                   jnp.dtype(mask.dtype).itemsize)
    atb, att = _choose_tiles(rows, cols, itemsize)
    if tb is not None:
        atb = tb
    if tt is not None:
        att = tt
    assert atb % 8 == 0 and att % 128 == 0

    grid = (pl.cdiv(rows, atb), pl.cdiv(cols, att))
    nbi = grid[0]

    kernel = functools.partial(_mape_kernel, rows=rows, cols=cols, tb=atb, tt=att)

    partials = pl.pallas_call(
        kernel,
        out_shape=jax.ShapeDtypeStruct((nbi, att), jnp.float32),
        grid_spec=pltpu.PrefetchScalarGridSpec(
            num_scalar_prefetch=0,
            grid=grid,
            in_specs=[
                pl.BlockSpec((atb, att), lambda i, j: (i, j)),
                pl.BlockSpec((atb, att), lambda i, j: (i, j)),
                pl.BlockSpec((atb, att), lambda i, j: (i, j)),
            ],
            out_specs=pl.BlockSpec((1, att), lambda i, j: (i, 0)),
        ),
        compiler_params=pltpu.CompilerParams(
            dimension_semantics=("parallel", "arbitrary"),
        ),
    )(f2, g2, m2)

    # Finish the reduction in the wrapper; divisor is the true element count.
    return jnp.sum(partials) * jnp.float32(1.0 / total)


def _mape_ref(forecast, target, mask):
    """Pure-JAX reference with identical divide_no_nan semantics."""
    f = forecast.astype(jnp.float32)
    tg = target.astype(jnp.float32)
    m = mask.astype(jnp.float32)
    w = m / tg
    w = jnp.where(jnp.isnan(w), 0.0, w)
    w = jnp.where(w == jnp.inf, 0.0, w)
    return jnp.mean(jnp.abs((f - tg) * w))


if __name__ == "__main__":
    key = jax.random.PRNGKey(0)
    k1, k2, k3 = jax.random.split(key, 3)

    # 1) Small [batch, time] shape consistent with the module (padded tile path).
    batch, time = 2, 16
    forecast = jax.random.normal(k1, (batch, time), dtype=jnp.float32)
    target = jax.random.normal(k2, (batch, time), dtype=jnp.float32)
    # Make a few targets exactly zero so the divide_no_nan path is exercised.
    target = target.at[0, 0].set(0.0).at[1, 5].set(0.0)
    mask = (jax.random.uniform(k3, (batch, time)) > 0.2).astype(jnp.float32)

    loss = mape_loss(None, 1, forecast, target, mask)
    jax.block_until_ready(loss)
    ref = _mape_ref(forecast, target, mask)
    assert jnp.allclose(loss, ref, rtol=1e-5, atol=1e-6), (loss, ref)

    # 2) Non-aligned shape with explicit small tiles: multi-tile grid, resident
    #    output accumulation, and both row/col padding masks exercised (3x3 grid).
    kb1, kb2, kb3 = jax.random.split(jax.random.PRNGKey(1), 3)
    b2, t2 = 20, 300
    f2 = jax.random.normal(kb1, (b2, t2), dtype=jnp.float32)
    g2 = jax.random.normal(kb2, (b2, t2), dtype=jnp.float32)
    g2 = g2.at[3, 7].set(0.0).at[11, 123].set(0.0)
    m2 = (jax.random.uniform(kb3, (b2, t2)) > 0.3).astype(jnp.float32)
    loss2 = mape_loss(None, 1, f2, g2, m2, tb=8, tt=128)
    jax.block_until_ready(loss2)
    ref2 = _mape_ref(f2, g2, m2)
    assert jnp.allclose(loss2, ref2, rtol=1e-5, atol=1e-6), (loss2, ref2)

    # 3) Narrow time dim with a free lane-dense reshape (b*t divisible by 4096).
    kc1, kc2, kc3 = jax.random.split(jax.random.PRNGKey(2), 3)
    b3, t3 = 32, 256
    f3 = jax.random.normal(kc1, (b3, t3), dtype=jnp.float32)
    g3 = jax.random.normal(kc2, (b3, t3), dtype=jnp.float32)
    g3 = g3.at[5, 17].set(0.0)
    m3 = (jax.random.uniform(kc3, (b3, t3)) > 0.5).astype(jnp.float32)
    loss3 = mape_loss(None, 1, f3, g3, m3)
    jax.block_until_ready(loss3)
    ref3 = _mape_ref(f3, g3, m3)
    assert jnp.allclose(loss3, ref3, rtol=1e-5, atol=1e-6), (loss3, ref3)

    # 4) bf16 inputs streamed as bf16 (dtype-aware tiles), cast to f32 in-kernel.
    kd1, kd2, kd3 = jax.random.split(jax.random.PRNGKey(3), 3)
    b4, t4 = 16, 128
    f4 = jax.random.normal(kd1, (b4, t4), dtype=jnp.bfloat16)
    g4 = jax.random.normal(kd2, (b4, t4), dtype=jnp.bfloat16)
    g4 = g4.at[2, 3].set(0.0)
    m4 = (jax.random.uniform(kd3, (b4, t4)) > 0.2).astype(jnp.bfloat16)
    loss4 = mape_loss(None, 1, f4, g4, m4)
    jax.block_until_ready(loss4)
    ref4 = _mape_ref(f4, g4, m4)
    assert jnp.allclose(loss4, ref4, rtol=1e-5, atol=1e-6), (loss4, ref4)

    print("KERNEL_OK")
</pallas_src>

<mosaic_0001>
module attributes {stable_mosaic.version = 11 : i64} {
  func.func @_mape_kernel(%arg0: i32, %arg1: i32, %arg2: memref<8x128xf32, #tpu.memory_space<vmem>>, %arg3: memref<8x128xf32, #tpu.memory_space<vmem>>, %arg4: memref<8x128xf32, #tpu.memory_space<vmem>>, %arg5: memref<1x128xf32, #tpu.memory_space<vmem>>) attributes {dimension_semantics = [#tpu.dimension_semantics<parallel>, #tpu.dimension_semantics<arbitrary>], iteration_bounds = array<i64: 1, 1>, scalar_prefetch = 0 : i64, scratch_operands = 0 : i64, tpu.core_type = #tpu.core_type<tc>, window_params = [{transform_indices = @transform_0, window_bounds = array<i64: 8, 128>}, {transform_indices = @transform_1, window_bounds = array<i64: 8, 128>}, {transform_indices = @transform_2, window_bounds = array<i64: 8, 128>}, {transform_indices = @transform_3, window_bounds = array<i64: 1, 128>}]} {
    %c0_i32 = arith.constant 0 : i32
    %0 = arith.cmpi eq, %arg1, %c0_i32 : i32
    %1 = arith.extui %0 : i1 to i32
    %c0_i32_0 = arith.constant 0 : i32
    %2 = arith.cmpi ne, %1, %c0_i32_0 : i32
    scf.if %2 {
      %cst_12 = arith.constant 0.000000e+00 : f32
      %25 = vector.broadcast %cst_12 : f32 to vector<1x128xf32>
      %c0_13 = arith.constant 0 : index
      %c0_14 = arith.constant 0 : index
      %26 = vector.load %arg5[%c0_13, %c0_14] : memref<1x128xf32, #tpu.memory_space<vmem>>, vector<1x128xf32>
      tpu.vector_store %arg5[%c0_13, %c0_14], %25 {strides = array<i32>} : memref<1x128xf32, #tpu.memory_space<vmem>>, vector<1x128xf32>,
    } else {
    }
    %c0 = arith.constant 0 : index
    %c0_1 = arith.constant 0 : index
    %3 = vector.load %arg2[%c0, %c0_1] : memref<8x128xf32, #tpu.memory_space<vmem>>, vector<8x128xf32>
    %c0_2 = arith.constant 0 : index
    %c0_3 = arith.constant 0 : index
    %4 = vector.load %arg3[%c0_2, %c0_3] : memref<8x128xf32, #tpu.memory_space<vmem>>, vector<8x128xf32>
    %c0_4 = arith.constant 0 : index
    %c0_5 = arith.constant 0 : index
    %5 = vector.load %arg4[%c0_4, %c0_5] : memref<8x128xf32, #tpu.memory_space<vmem>>, vector<8x128xf32>
    %6 = arith.divf %5, %4 : vector<8x128xf32>
    %7 = arith.cmpf one, %6, %6 : vector<8x128xf32>
    %cst = arith.constant 0.000000e+00 : f32
    %8 = vector.broadcast %cst : f32 to vector<8x128xf32>
    %9 = arith.select %7, %8, %6 : vector<8x128xi1>, vector<8x128xf32>
    %cst_6 = arith.constant 0x7F800000 : f32
    %10 = vector.broadcast %cst_6 : f32 to vector<8x128xf32>
    %11 = arith.cmpf oeq, %9, %10 : vector<8x128xf32>
    %cst_7 = arith.constant 0.000000e+00 : f32
    %12 = vector.broadcast %cst_7 : f32 to vector<8x128xf32>
    %13 = arith.select %11, %12, %9 : vector<8x128xi1>, vector<8x128xf32>
    %14 = arith.subf %3, %4 : vector<8x128xf32>
    %15 = arith.mulf %14, %13 : vector<8x128xf32>
    %16 = math.absf %15 : vector<8x128xf32>
    %c0_i32_8 = arith.constant 0 : i32
    %17 = arith.cmpi eq, %arg0, %c0_i32_8 : i32
    %c0_i32_9 = arith.constant 0 : i32
    %18 = arith.cmpi eq, %arg1, %c0_i32_9 : i32
    %19 = arith.ori %17, %18 : i1
    %20 = arith.extui %19 : i1 to i32
    %c0_i32_10 = arith.constant 0 : i32
    %21 = arith.cmpi ne, %20, %c0_i32_10 : i32
    scf.if %21 {
      %c8_i32 = arith.constant 8 : i32
      %25 = arith.muli %arg0, %c8_i32 : i32
      %26 = tpu.iota {dimensions = array<i32: 0>} : vector<8x128xi32>
      %27 = vector.broadcast %25 : i32 to vector<8x128xi32>
      %28 = arith.addi %27, %26 : vector<8x128xi32>
      %c2_i32 = arith.constant 2 : i32
      %29 = vector.broadcast %c2_i32 : i32 to vector<8x128xi32>
      %30 = arith.cmpi slt, %28, %29 : vector<8x128xi32>
      %c128_i32 = arith.constant 128 : i32
      %31 = arith.muli %arg1, %c128_i32 : i32
      %32 = tpu.iota {dimensions = array<i32: 1>} : vector<8x128xi32>
      %33 = vector.broadcast %31 : i32 to vector<8x128xi32>
      %34 = arith.addi %33, %32 : vector<8x128xi32>
      %c16_i32 = arith.constant 16 : i32
      %35 = vector.broadcast %c16_i32 : i32 to vector<8x128xi32>
      %36 = arith.cmpi slt, %34, %35 : vector<8x128xi32>
      %37 = arith.andi %30, %36 : vector<8x128xi1>
      %cst_12 = arith.constant 0.000000e+00 : f32
      %38 = vector.broadcast %cst_12 : f32 to vector<8x128xf32>
      %39 = arith.select %37, %16, %38 : vector<8x128xi1>, vector<8x128xf32>
      %c0_13 = arith.constant 0 : index
      %c0_14 = arith.constant 0 : index
      %40 = vector.load %arg5[%c0_13, %c0_14] : memref<1x128xf32, #tpu.memory_space<vmem>>, vector<1x128xf32>
      %cst_15 = arith.constant dense<0.000000e+00> : vector<128xf32>
      %41 = vector.multi_reduction <add>, %39, %cst_15 [0] : vector<8x128xf32> to vector<128xf32>
      %42 = vector.shape_cast %41 : vector<128xf32> to vector<1x128xf32>
      %43 = arith.addf %40, %42 : vector<1x128xf32>
      %c0_16 = arith.constant 0 : index
      %c0_17 = arith.constant 0 : index
      %44 = vector.load %arg5[%c0_16, %c0_17] : memref<1x128xf32, #tpu.memory_space<vmem>>, vector<1x128xf32>
      tpu.vector_store %arg5[%c0_16, %c0_17], %43 {strides = array<i32>} : memref<1x128xf32, #tpu.memory_space<vmem>>, vector<1x128xf32>,
    } else {
    }
    %true = arith.constant true
    %22 = arith.xori %19, %true : i1
    %23 = arith.extui %22 : i1 to i32
    %c0_i32_11 = arith.constant 0 : i32
    %24 = arith.cmpi ne, %23, %c0_i32_11 : i32
    scf.if %24 {
      %c0_12 = arith.constant 0 : index
      %c0_13 = arith.constant 0 : index
      %25 = vector.load %arg5[%c0_12, %c0_13] : memref<1x128xf32, #tpu.memory_space<vmem>>, vector<1x128xf32>
      %cst_14 = arith.constant dense<0.000000e+00> : vector<128xf32>
      %26 = vector.multi_reduction <add>, %16, %cst_14 [0] : vector<8x128xf32> to vector<128xf32>
      %27 = vector.shape_cast %26 : vector<128xf32> to vector<1x128xf32>
      %28 = arith.addf %25, %27 : vector<1x128xf32>
      %c0_15 = arith.constant 0 : index
      %c0_16 = arith.constant 0 : index
      %29 = vector.load %arg5[%c0_15, %c0_16] : memref<1x128xf32, #tpu.memory_space<vmem>>, vector<1x128xf32>
      tpu.vector_store %arg5[%c0_15, %c0_16], %28 {strides = array<i32>} : memref<1x128xf32, #tpu.memory_space<vmem>>, vector<1x128xf32>,
    } else {
    }
    return
  }
  func.func @transform_0(%arg0: i32, %arg1: i32) -> (i32, i32) {
    %c0_i32 = arith.constant 0 : i32
    return %arg0, %arg1 : i32, i32
  }
  func.func @transform_1(%arg0: i32, %arg1: i32) -> (i32, i32) {
    %c0_i32 = arith.constant 0 : i32
    return %arg0, %arg1 : i32, i32
  }
  func.func @transform_2(%arg0: i32, %arg1: i32) -> (i32, i32) {
    %c0_i32 = arith.constant 0 : i32
    return %arg0, %arg1 : i32, i32
  }
  func.func @transform_3(%arg0: i32, %arg1: i32) -> (i32, i32) {
    %c0_i32 = arith.constant 0 : i32
    %c0_i32_0 = arith.constant 0 : i32
    return %arg0, %c0_i32 : i32, i32
  }
}

</mosaic_0001>

<bundles_post_ra>
// kernel: tpu_custom_call.1
= control target key start
LH: loop header
LB: loop body
LE: loop exit
PB: predicated region body
PF: predicated region fallthrough
CT: control target
= control target key end

     0   :  { %8 = vsyncpa [#allocation3], 0  ;;  %s211_s0 = inlined_call_operand.hbm [shape: f32[2,16], index: 0, kind: input, shape index: {}]   ;;  %s212_s1 = inlined_call_operand.vmem [shape: f32[2,16], index: 1, kind: input, shape index: {}]   ;;  %s213_s2 = inlined_call_operand.vmem [shape: f32[2,16], index: 2, kind: input, shape index: {}]   ;;  %s214_s3 = inlined_call_operand.hbm [shape: f32[1,128], index: 3, kind: output, shape index: {}]  }
   0x1   :  { %9 = vsyncpa [#allocation4], 0 }
   0x2   :  { %14 = vsyncadd [#allocation3], 96  ;;  %s156_s12 = smov [#allocation2]   ;;  %s108_s16 = scalar_lea.hbm %s211_s0, 32 }
   0x3   :  { %s15_s13 = sshll.u32 %s156_s12, 4  ;;  %p109_p0 = scmp.ne.s32.totalorder %s211_s0, %s108_s16  ;;  %s16_s13 = int_to_ptr.vmem [resolvable:$true] %s15_s13 }
   0x4   :  { %p112_p1 = scmp.lt.u32.totalorder %s108_s16, %s211_s0 }
   0x6   :  { %p114_p2 = pnand %p112_p1, %p109_p0 }
   0x8   :  { %117 = shalt.err (!%p114_p2)
}
   0x9   :  { %s118_s21 = scalar_lea.vmem %s16_s13, 32  ;;  %s122_s22 = scalar_lea.vmem %s16_s13, 128 }
   0xa   :  { %p119_p3 = scmp.ne.s32.totalorder %s16_s13, %s118_s21  ;;  %p123_p4 = scmp.lt.s32.totalorder %s16_s13, %s16_s13 }
   0xb   :  { %p124_p5 = scmp.lt.s32.totalorder %s122_s22, %s118_s21 }
   0xd   :  { %p125_p6 = por %p124_p5, %p123_p4 }
   0xf   :  { %p126_p7 = pnand %p125_p6, %p119_p3 }
  0x11   :  { %129 = shalt.err (!%p126_p7)
}
  0x12   :  { %s157_s23 = smov 32   ;;  %s158_s24 = smov 2  }
  0x13   :  { %21 = dma.hbm_to_vmem [thread:$0]  %s211_s0, 32, %s16_s13, [#allocation3], %s157_s23, %s157_s23, %s158_s24  }
  0x14   :  { %152 = dma.done.wait [#allocation3], 128  }
  0x15   :  { %153 = vsyncadd [#allocation3], 4294967168  ;;  %v159_v0 = vmov 0.0   ;;  %v35_v1 = vld [vmem:[%s212_s1] sm:$0xff]  ;;  %v52_v2 = vlaneseq  ;;  %s160_s0 = smov [#allocation5]  }
  0x16   :  { %33 = vst [vmem:[#allocation5] sm:$0x1] %v159_v0  ;;  %106 = vrcp.f32 %v35_v1  ;;  %v36_v3 = vld [vmem:[%s213_s2] sm:$0xff]  ;;  %s92_s1 = sshll.u32 %s160_s0, 4  ;;  %s93_s1 = int_to_ptr.vmem [resolvable:$true] %s92_s1 }
  0x17   :  { %v34_v5 = vld [vmem:[#allocation2] sm:$0xff]  ;;  %v53_v7 = vshrl.u32 %v52_v2, 7  ;;  %v59_v8 = vand.u32 127, %v52_v2  ;;  %s130_s2 = scalar_lea.vmem %s93_s1, 16  ;;  %s134_s4 = scalar_lea.vmem %s93_s1, 32 }
  0x18   :  { %v43_v9 = vsub.f32 %v34_v5, %v35_v1  ;;  %p131_p8 = scmp.ne.s32.totalorder %s93_s1, %s130_s2  ;;  %p135_p9 = scmp.lt.s32.totalorder %s93_s1, %s93_s1 }
  0x19   :  { %vm56_vm2 = vcmp.lt.s32.totalorder %v53_v7, 2  ;;  %vm62_vm3 = vcmp.lt.s32.totalorder %v59_v8, 16  ;;  %p136_p10 = scmp.lt.s32.totalorder %s134_s4, %s130_s2 }
  0x1a   :  { %vm63_vm4 = vmand %vm56_vm2, %vm62_vm3 }
  0x1b   :  { %p137_p11 = por %p136_p10, %p135_p9 }
  0x1d   :  { %v65_v20 = vld [vmem:[#allocation5] sm:$0x1]  ;;  %p138_p12 = pnand %p137_p11, %p131_p8 }
  0x20   :  { %v107_v4 = vpop.eup %106 }
  0x21   :  { %v38_v6 = vmul.f32 %v107_v4, %v36_v3 }
  0x23   :  { %vm39_vm0 = vcmp.ne.f32.partialorder %v38_v6, %v38_v6 }
  0x24   :  { %v40_v10 = vsel %vm39_vm0, 0.0, %v38_v6 }
  0x25   :  { %vm41_vm1 = vcmp.eq.f32.partialorder %v40_v10, inf }
  0x26   :  { %v42_v11 = vsel %vm41_vm1, 0.0, %v40_v10 }
  0x27   :  { %v44_v12 = vmul.f32 %v43_v9, %v42_v11 }
  0x29   :  { %v45_v13 = vand.u32 2147483647, %v44_v12 }
  0x2b   :  { %v64_v14 = vsel %vm63_vm4, %v45_v13, 0.0 }
  0x2c   :  { %v66_v15 = vrot.slane %v64_v14, 4 }
  0x2e   :  { %v67_v16 = vadd.f32 %v66_v15, %v64_v14 }
  0x30   :  { %v68_v17 = vrot.slane %v67_v16, 2 }
  0x32   :  { %v69_v18 = vadd.f32 %v68_v17, %v67_v16 }
  0x34   :  { %v70_v19 = vrot.slane %v69_v18, 1 }
  0x36   :  { %v71_v21 = vadd.f32 %v70_v19, %v69_v18 }
  0x38   :  { %v72_v22 = vadd.f32 %v71_v21, %v65_v20 }
  0x3a   :  { %73 = vst [vmem:[#allocation5] sm:$0x1] %v72_v22 }
  0x3b   :  { %141 = shalt.err (!%p138_p12)
}
  0x3c   :  { %s142_s7 = scalar_lea.hbm %s214_s3, 16 }
  0x3d   :  { %p143_p13 = scmp.ne.s32.totalorder %s214_s3, %s142_s7  ;;  %p146_p0 = scmp.lt.u32.totalorder %s142_s7, %s214_s3 }
  0x3f   :  { %p148_p1 = pnand %p146_p0, %p143_p13 }
  0x41   :  { %151 = shalt.err (!%p148_p1)
}
  0x42   :  { %95 = dma.vmem_to_hbm [thread:$0]  %s93_s1, 16, %s214_s3, [#allocation4]  }
  0x43   :  { %154 = dma.done.wait [#allocation4], 16  }
  0x44   :  { %155 = vsyncadd [#allocation4], 4294967280 }
  0x45   :  { %99 = vsyncpa [#allocation3], 1 }
  0x46   :  { %100 = vsyncpa [#allocation4], 1 }

</bundles_post_ra>
